<compile_context>
chip_gen: v7x
topology: tpu7x:2x2x1
jax: 0.10.0
libtpu: 0.0.40
codegen_flags: <defaults>
</compile_context>

<pallas_src>
import functools

import jax
import jax.numpy as jnp
from jax.experimental import pallas as pl
from jax.experimental.pallas import tpu as pltpu

NEG_SLOPE = 0.01  # nn.LeakyReLU default


def _round_up(x, m):
    return (x + m - 1) // m * m


def _linear_kernel(x_ref, w_ref, b_ref, o_ref, acc_ref):
    k = pl.program_id(2)

    @pl.when(k == 0)
    def _():
        acc_ref[...] = jnp.zeros_like(acc_ref)

    # MXU matmul on the current (tm, tk) x (tk, tn) tiles, f32 accumulation.
    acc_ref[...] += jnp.dot(
        x_ref[...], w_ref[...], preferred_element_type=jnp.float32
    )

    # Finalize: bias + LeakyReLU exactly once per output tile, then cast/store.
    @pl.when(k == pl.num_programs(2) - 1)
    def _():
        y = acc_ref[...] + b_ref[...]            # (tm, tn) + (1, tn) broadcast
        y = jnp.where(y >= 0, y, NEG_SLOPE * y)  # LeakyReLU(0.01)
        o_ref[...] = y.astype(o_ref.dtype)


@functools.partial(jax.jit, static_argnames=("tm", "tn", "tk"))
def linear_forward(x, w_t, b, *, tm=128, tn=128, tk=256):
    """x: (B, in), w_t: (in, out), b: (out,) -> (B, out) = LeakyReLU(x @ w_t + b)."""
    B, IN = x.shape
    OUT = w_t.shape[1]

    # Clamp tile sizes for small problems while keeping TPU layout alignment:
    # tm multiple of 8 (f32 sublanes), tn/tk multiples of 128 (lane-dense).
    tm = min(tm, _round_up(B, 8))
    tn = min(tn, _round_up(OUT, 128))
    tk = min(tk, _round_up(IN, 128))

    Bp = _round_up(B, tm)
    INp = _round_up(IN, tk)
    OUTp = _round_up(OUT, tn)

    # Zero-pad to tile-aligned shapes (zeros in K add nothing to the dot;
    # padded N columns are sliced away below).
    xp = x if (Bp == B and INp == IN) else jnp.pad(x, ((0, Bp - B), (0, INp - IN)))
    wp = w_t if (INp == IN and OUTp == OUT) else jnp.pad(
        w_t, ((0, INp - IN), (0, OUTp - OUT)))
    bp = b if OUTp == OUT else jnp.pad(b, (0, OUTp - OUT))
    bp = bp.reshape(1, OUTp)

    grid = (Bp // tm, OUTp // tn, INp // tk)

    out = pl.pallas_call(
        _linear_kernel,
        out_shape=jax.ShapeDtypeStruct((Bp, OUTp), x.dtype),
        grid_spec=pltpu.PrefetchScalarGridSpec(
            num_scalar_prefetch=0,
            grid=grid,
            in_specs=[
                pl.BlockSpec((tm, tk), lambda i, j, k: (i, k)),   # x tile
                pl.BlockSpec((tk, tn), lambda i, j, k: (k, j)),   # w tile
                pl.BlockSpec((1, tn), lambda i, j, k: (0, j)),    # bias tile
            ],
            out_specs=pl.BlockSpec((tm, tn), lambda i, j, k: (i, j)),
            scratch_shapes=[pltpu.VMEM((tm, tn), jnp.float32)],
        ),
        compiler_params=pltpu.CompilerParams(
            # M/N parallel (megacore on v7x), K reduction last and arbitrary.
            dimension_semantics=("parallel", "parallel", "arbitrary"),
            # Safe on v5e/v6e (128 MiB phys) and v7x (64 MiB phys, 32 MiB scoped
            # default); tiles here are << this budget.
            vmem_limit_bytes=32 * 1024 * 1024,
        ),
        cost_estimate=pl.CostEstimate(
            flops=2 * Bp * INp * OUTp,
            bytes_accessed=4 * (Bp * INp + INp * OUTp + Bp * OUTp + OUTp),
            transcendentals=0,
        ),
    )(xp, wp, bp)

    return out[:B, :OUT]


def reference_forward(x, w_t, b):
    y = x @ w_t + b.reshape(1, -1)
    return jnp.where(y >= 0, y, NEG_SLOPE * y)


if __name__ == "__main__":
    key = jax.random.PRNGKey(0)

    # (batch, in_features, out_features): a tiny unaligned case (exercises the
    # padding path) and a larger case that exercises the tiled K reduction.
    shapes = [(8, 32, 64), (256, 384, 512)]

    for batch, in_features, out_features in shapes:
        kx, kw, kb, key = jax.random.split(key, 4)

        # Deterministic param init (mimics nn.Linear's uniform(-1/sqrt(in), 1/sqrt(in)))
        bound = 1.0 / (in_features ** 0.5)
        w = jax.random.uniform(kw, (out_features, in_features),
                               minval=-bound, maxval=bound, dtype=jnp.float32)
        b = jax.random.uniform(kb, (out_features,),
                               minval=-bound, maxval=bound, dtype=jnp.float32)
        x = jax.random.normal(kx, (batch, in_features), dtype=jnp.float32)

        w_t = w.T  # (in, out): lane-dense MXU output

        out = linear_forward(x, w_t, b)
        out = jax.block_until_ready(out)

        ref = reference_forward(x, w_t, b)
        assert out.shape == (batch, out_features)
        assert jnp.allclose(out, ref, atol=1e-4, rtol=1e-4), (
            f"mismatch vs reference for shape {(batch, in_features, out_features)}")

    print("KERNEL_OK")
</pallas_src>

<mosaic_0001>
module attributes {stable_mosaic.version = 11 : i64} {
  func.func @_linear_kernel(%arg0: i32, %arg1: i32, %arg2: i32, %arg3: memref<8x128xf32, #tpu.memory_space<vmem>>, %arg4: memref<128x128xf32, #tpu.memory_space<vmem>>, %arg5: memref<1x128xf32, #tpu.memory_space<vmem>>, %arg6: memref<8x128xf32, #tpu.memory_space<vmem>>, %arg7: memref<8x128xf32, #tpu.memory_space<vmem>>) attributes {dimension_semantics = [#tpu.dimension_semantics<parallel>, #tpu.dimension_semantics<parallel>, #tpu.dimension_semantics<arbitrary>], iteration_bounds = array<i64: 1, 1, 1>, scalar_prefetch = 0 : i64, scratch_operands = 1 : i64, tpu.core_type = #tpu.core_type<tc>, window_params = [{transform_indices = @transform_0, window_bounds = array<i64: 8, 128>}, {transform_indices = @transform_1, window_bounds = array<i64: 128, 128>}, {transform_indices = @transform_2, window_bounds = array<i64: 1, 128>}, {transform_indices = @transform_3, window_bounds = array<i64: 8, 128>}]} {
    %c0_i32 = arith.constant 0 : i32
    %0 = arith.cmpi eq, %arg2, %c0_i32 : i32
    %1 = arith.extui %0 : i1 to i32
    %c0_i32_0 = arith.constant 0 : i32
    %2 = arith.cmpi ne, %1, %c0_i32_0 : i32
    scf.if %2 {
      %cst_10 = arith.constant 0.000000e+00 : f32
      %12 = vector.broadcast %cst_10 : f32 to vector<8x128xf32>
      %c0_11 = arith.constant 0 : index
      %c0_12 = arith.constant 0 : index
      %13 = vector.load %arg7[%c0_11, %c0_12] : memref<8x128xf32, #tpu.memory_space<vmem>>, vector<8x128xf32>
      tpu.vector_store %arg7[%c0_11, %c0_12], %12 {strides = array<i32>} : memref<8x128xf32, #tpu.memory_space<vmem>>, vector<8x128xf32>,
    } else {
    }
    %c0 = arith.constant 0 : index
    %c0_1 = arith.constant 0 : index
    %3 = vector.load %arg7[%c0, %c0_1] : memref<8x128xf32, #tpu.memory_space<vmem>>, vector<8x128xf32>
    %c0_2 = arith.constant 0 : index
    %c0_3 = arith.constant 0 : index
    %4 = vector.load %arg3[%c0_2, %c0_3] : memref<8x128xf32, #tpu.memory_space<vmem>>, vector<8x128xf32>
    %c0_4 = arith.constant 0 : index
    %c0_5 = arith.constant 0 : index
    %5 = vector.load %arg4[%c0_4, %c0_5] : memref<128x128xf32, #tpu.memory_space<vmem>>, vector<128x128xf32>
    %cst = arith.constant dense<0.000000e+00> : vector<8x128xf32>
    %6 = tpu.matmul %4, %5, %cst {dimension_numbers = #tpu.dot_dimension_numbers<[1], [0], [0], [1], [0, 0, 1, 1], [], []>} : vector<8x128xf32>, vector<128x128xf32>, vector<8x128xf32> -> vector<8x128xf32>
    %7 = arith.addf %3, %6 : vector<8x128xf32>
    %c0_6 = arith.constant 0 : index
    %c0_7 = arith.constant 0 : index
    %8 = vector.load %arg7[%c0_6, %c0_7] : memref<8x128xf32, #tpu.memory_space<vmem>>, vector<8x128xf32>
    tpu.vector_store %arg7[%c0_6, %c0_7], %7 {strides = array<i32>} : memref<8x128xf32, #tpu.memory_space<vmem>>, vector<8x128xf32>,
    %c0_i32_8 = arith.constant 0 : i32
    %9 = arith.cmpi eq, %arg2, %c0_i32_8 : i32
    %10 = arith.extui %9 : i1 to i32
    %c0_i32_9 = arith.constant 0 : i32
    %11 = arith.cmpi ne, %10, %c0_i32_9 : i32
    scf.if %11 {
      %c0_10 = arith.constant 0 : index
      %c0_11 = arith.constant 0 : index
      %12 = vector.load %arg7[%c0_10, %c0_11] : memref<8x128xf32, #tpu.memory_space<vmem>>, vector<8x128xf32>
      %c0_12 = arith.constant 0 : index
      %c0_13 = arith.constant 0 : index
      %13 = vector.load %arg5[%c0_12, %c0_13] : memref<1x128xf32, #tpu.memory_space<vmem>>, vector<1x128xf32>
      %14 = vector.broadcast %13 : vector<1x128xf32> to vector<8x128xf32>
      %15 = arith.addf %12, %14 : vector<8x128xf32>
      %cst_14 = arith.constant 0.000000e+00 : f32
      %16 = vector.broadcast %cst_14 : f32 to vector<8x128xf32>
      %17 = arith.cmpf oge, %15, %16 : vector<8x128xf32>
      %cst_15 = arith.constant 0.00999999977 : f32
      %18 = vector.broadcast %cst_15 : f32 to vector<8x128xf32>
      %19 = arith.mulf %18, %15 : vector<8x128xf32>
      %20 = arith.select %17, %15, %19 : vector<8x128xi1>, vector<8x128xf32>
      %c0_16 = arith.constant 0 : index
      %c0_17 = arith.constant 0 : index
      %21 = vector.load %arg6[%c0_16, %c0_17] : memref<8x128xf32, #tpu.memory_space<vmem>>, vector<8x128xf32>
      tpu.vector_store %arg6[%c0_16, %c0_17], %20 {strides = array<i32>} : memref<8x128xf32, #tpu.memory_space<vmem>>, vector<8x128xf32>,
    } else {
    }
    return
  }
  func.func @transform_0(%arg0: i32, %arg1: i32, %arg2: i32) -> (i32, i32) {
    %c0_i32 = arith.constant 0 : i32
    return %arg0, %arg2 : i32, i32
  }
  func.func @transform_1(%arg0: i32, %arg1: i32, %arg2: i32) -> (i32, i32) {
    %c0_i32 = arith.constant 0 : i32
    return %arg2, %arg1 : i32, i32
  }
  func.func @transform_2(%arg0: i32, %arg1: i32, %arg2: i32) -> (i32, i32) {
    %c0_i32 = arith.constant 0 : i32
    %c0_i32_0 = arith.constant 0 : i32
    return %c0_i32, %arg1 : i32, i32
  }
  func.func @transform_3(%arg0: i32, %arg1: i32, %arg2: i32) -> (i32, i32) {
    %c0_i32 = arith.constant 0 : i32
    return %arg0, %arg1 : i32, i32
  }
}

</mosaic_0001>

<bundles_post_ra>
// kernel: linear_forward.1
= control target key start
LH: loop header
LB: loop body
LE: loop exit
PB: predicated region body
PF: predicated region fallthrough
CT: control target
= control target key end

     0   :  { %v245_v3 = vmov 0.0|0.0   ;;  %vm246_vm0 = vmmov 0   ;;  %v247_v6 = vmov 0.0   ;;  %s335_s0 = inlined_call_operand.vmem [shape: f32[8,128], index: 0, kind: input, shape index: {}]   ;;  %s336_s1 = inlined_call_operand.vmem [shape: f32[128,128], index: 1, kind: input, shape index: {}]   ;;  %s337_s2 = inlined_call_operand.vmem [shape: f32[1,128], index: 2, kind: input, shape index: {}]   ;;  %s338_s3 = inlined_call_operand.hbm [shape: f32[8,128], index: 3, kind: output, shape index: {}]  }
   0x1   :  { %v22_v0 = vld [vmem:[%s336_s1] sm:$0xff]  ;;  %v23_v1 = vld [vmem:[%s336_s1 + $0x8] sm:$0xff]  ;;  %v24_v2 = vld [vmem:[%s336_s1 + $0x10] sm:$0xff]  ;;  %193 = vmatprep.subr.bf16.mxu0 %v245_v3  ;;  %190 = vmatprep.mubr.msk.f32.mxu0 %vm246_vm0, %v247_v6 }
   0x2   :  { %v194_v4 = vpack.c.bf16 %v23_v1, %v22_v0  ;;  %v25_v5 = vld [vmem:[%s336_s1 + $0x18] sm:$0xff]  ;;  %v26_v8 = vld [vmem:[%s336_s1 + $0x20] sm:$0xff]  ;;  %v27_v9 = vld [vmem:[%s336_s1 + $0x28] sm:$0xff] }
   0x3   :  { %v197_v7 = vpack.c.bf16 %v25_v5, %v24_v2 }
   0x4   :  { %195 = vmatpush3.bf16.msra.mxu0 %v194_v4 }
   0x5   :  { %196 = vmatprep.subr.bf16.mxu0 %v245_v3 }
   0x6   :  { %8 = vsyncpa [#allocation4], 0  ;;  %v200_v10 = vpack.c.bf16 %v27_v9, %v26_v8  ;;  %v28_v11 = vld [vmem:[%s336_s1 + $0x30] sm:$0xff]  ;;  %v29_v12 = vld [vmem:[%s336_s1 + $0x38] sm:$0xff]  ;;  %s248_s21 = smov [#allocation3]  }
   0x7   :  { %v203_v13 = vpack.c.bf16 %v29_v12, %v28_v11  ;;  %v30_v14 = vld [vmem:[%s336_s1 + $0x40] sm:$0xff]  ;;  %v31_v15 = vld [vmem:[%s336_s1 + $0x48] sm:$0xff]  ;;  %v32_v17 = vld [vmem:[%s336_s1 + $0x50] sm:$0xff]  ;;  %s132_s22 = sshll.u32 %s248_s21, 4  ;;  %s133_s22 = int_to_ptr.vmem [resolvable:$true] %s132_s22 }
   0x8   :  { %198 = vmatpush3.bf16.msra.mxu0 %v197_v7  ;;  %v206_v16 = vpack.c.bf16 %v31_v15, %v30_v14  ;;  %v33_v18 = vld [vmem:[%s336_s1 + $0x58] sm:$0xff]  ;;  %v34_v20 = vld [vmem:[%s336_s1 + $0x60] sm:$0xff]  ;;  %v35_v21 = vld [vmem:[%s336_s1 + $0x68] sm:$0xff]  ;;  %p226_p1 = scmp.lt.s32.totalorder %s133_s22, %s133_s22 }
   0x9   :  { %199 = vmatprep.subr.bf16.mxu0 %v245_v3  ;;  %v209_v19 = vpack.c.bf16 %v33_v18, %v32_v17  ;;  %v212_v22 = vpack.c.bf16 %v35_v21, %v34_v20  ;;  %v36_v23 = vld [vmem:[%s336_s1 + $0x70] sm:$0xff]  ;;  %v37_v24 = vld [vmem:[%s336_s1 + $0x78] sm:$0xff]  ;;  %v21_v26 = vld [vmem:[%s335_s0] sm:$0xff]  ;;  %s221_s1 = scalar_lea.vmem %s133_s22, 128 }
   0xa   :  { %v215_v25 = vpack.c.bf16 %v37_v24, %v36_v23  ;;  %v140_v27 = vld [vmem:[%s337_s2] ss:$0 sm:$0xff]  ;;  %p222_p0 = scmp.ne.s32.totalorder %s133_s22, %s221_s1  ;;  %p227_p2 = scmp.lt.s32.totalorder %s221_s1, %s221_s1 }
   0xc   :  { %201 = vmatpush3.bf16.msra.mxu0 %v200_v10  ;;  %p228_p3 = por %p227_p2, %p226_p1 }
   0xd   :  { %202 = vmatprep.subr.bf16.mxu0 %v245_v3 }
   0xe   :  { %p229_p4 = pnand %p228_p3, %p222_p0 }
  0x10   :  { %204 = vmatpush3.bf16.msra.mxu0 %v203_v13 }
  0x11   :  { %205 = vmatprep.subr.bf16.mxu0 %v245_v3 }
  0x14   :  { %207 = vmatpush3.bf16.msra.mxu0 %v206_v16 }
  0x15   :  { %208 = vmatprep.subr.bf16.mxu0 %v245_v3 }
  0x18   :  { %210 = vmatpush3.bf16.msra.mxu0 %v209_v19 }
  0x19   :  { %211 = vmatprep.subr.bf16.mxu0 %v245_v3 }
  0x1c   :  { %213 = vmatpush3.bf16.msra.mxu0 %v212_v22 }
  0x1d   :  { %214 = vmatprep.subr.bf16.mxu0 %v245_v3 }
  0x20   :  { %216 = vmatpush3.bf16.msra.mxu0 %v215_v25 }
  0x23   :  { %191 = vmatmul.mubr.f32.vlgmr.msra.gmra.mrb[0].mxu0 %v21_v26 }
  0xf6   :  { %v104_v28 = vpop.f32.mrb[0].mxu0 }
  0xf7   :  { %v121_v29 = vadd.f32 %v140_v27, %v104_v28  ;;  %v192_v30 = vpop.f32.mrb[1].mxu0 }
  0xf9   :  { %v123_v31 = vmul.f32 0.01, %v121_v29  ;;  %vm122_vm1 = vcmp.ge.f32.partialorder %v121_v29, 0.0 }
  0xfb   :  { %v124_v32 = vsel %vm122_vm1, %v121_v29, %v123_v31 }
  0xfc   :  { %125 = vst [vmem:[#allocation3] sm:$0xff] %v124_v32 }
  0xfd   :  { %232 = shalt.err (!%p229_p4)
}
  0xfe   :  { %s233_s2 = scalar_lea.hbm %s338_s3, 128 }
  0xff   :  { %p234_p5 = scmp.ne.s32.totalorder %s338_s3, %s233_s2  ;;  %p237_p6 = scmp.lt.u32.totalorder %s233_s2, %s338_s3 }
 0x101   :  { %p239_p7 = pnand %p237_p6, %p234_p5 }
 0x103   :  { %242 = shalt.err (!%p239_p7)
}
 0x104   :  { %135 = dma.vmem_to_hbm [thread:$0]  %s133_s22, 128, %s338_s3, [#allocation4]  }
 0x105   :  { %243 = dma.done.wait [#allocation4], 128  }
 0x106   :  { %244 = vsyncadd [#allocation4], 4294967168 }
 0x107   :  { %139 = vsyncpa [#allocation4], 1 }

</bundles_post_ra>
